<compile_context>
chip_gen: v6e
topology: v6e:2x2x1
jax: 0.10.0
libtpu: 0.0.40
codegen_flags: <defaults>
</compile_context>

<pallas_src>
import math

import jax
import jax.numpy as jnp
from jax import lax
from jax.experimental import pallas as pl
from jax.experimental.pallas import tpu as pltpu


def _round_up(n, m):
    return ((n + m - 1) // m) * m


def _pad2d(a, rows, cols):
    r, c = a.shape
    if r == rows and c == cols:
        return a
    return jnp.pad(a, ((0, rows - r), (0, cols - c)))


def _gelu_exact(h):
    # erf-based GELU in f32 (matches torch.nn.GELU() default).
    return 0.5 * h * (1.0 + lax.erf(h * 0.7071067811865476))


def _make_kernel(nk, tile_k):
    """Kernel factory. nk = number of hidden chunks (trace-time constant)."""
    if nk == 1:
        # Fast path: no reduction over hidden chunks -> no accumulator, no
        # init/finalize branches; second matmul writes straight to o_ref.
        def kernel(x_ref, w1_ref, b1_ref, w2_ref, b2_ref, o_ref):
            h = jnp.dot(x_ref[...], w1_ref[...],
                        preferred_element_type=jnp.float32) + b1_ref[...]
            h = _gelu_exact(h)
            y = jnp.dot(h.astype(w2_ref.dtype), w2_ref[...],
                        preferred_element_type=jnp.float32) + b2_ref[...]
            o_ref[...] = y.astype(o_ref.dtype)
        return kernel, False

    def kernel(x_ref, w1_ref, b1_ref, w2_ref, b2_ref, o_ref, acc_ref):
        # Hidden dimension chunked with static slices of the *resident*
        # weights; the f32 GELU temp is bounded to (tile_m, tile_k).
        for k in range(nk):
            lo = k * tile_k
            h = jnp.dot(x_ref[...], w1_ref[:, lo:lo + tile_k],
                        preferred_element_type=jnp.float32)
            h = _gelu_exact(h + b1_ref[:, lo:lo + tile_k])
            contrib = jnp.dot(h.astype(w2_ref.dtype),
                              w2_ref[lo:lo + tile_k, :],
                              preferred_element_type=jnp.float32)
            if k == 0:
                acc_ref[...] = contrib
            else:
                acc_ref[...] += contrib
        o_ref[...] = (acc_ref[...] + b2_ref[...]).astype(o_ref.dtype)
    return kernel, True


def prepare_params(w1, b1, w2, b2, *, tile_k=512):
    """Pad to lane-dense multiples of 128 and cast weights to bf16 ONCE,
    hoisted out of the per-call hot path.  Weights are stored pre-transposed
    as (in_features, out_features).  Zero padding is exact: padded b1 entries
    are 0, GELU(0) = 0, and padded W2 rows/cols are 0."""
    dim, hidden = w1.shape
    assert w2.shape == (hidden, dim)
    dim_p = _round_up(dim, 128)
    tile_k = min(_round_up(tile_k, 128), _round_up(hidden, 128))
    hid_p = _round_up(hidden, tile_k)
    f32 = jnp.float32
    return dict(
        w1=_pad2d(jnp.asarray(w1, f32), dim_p, hid_p).astype(jnp.bfloat16),
        b1=_pad2d(jnp.asarray(b1, f32).reshape(1, hidden), 1, hid_p),
        w2=_pad2d(jnp.asarray(w2, f32), hid_p, dim_p).astype(jnp.bfloat16),
        b2=_pad2d(jnp.asarray(b2, f32).reshape(1, dim), 1, dim_p),
        dim=dim, hidden=hidden, dim_p=dim_p, hid_p=hid_p, tile_k=tile_k,
    )


def mlp_block(x, params, *, tile_m=512):
    """x: (..., dim).  params: output of prepare_params().
    Returns (..., dim) in x.dtype.  Dropout is identity (inference)."""
    dim = params["dim"]
    dim_p, hid_p, tile_k = params["dim_p"], params["hid_p"], params["tile_k"]
    assert x.shape[-1] == dim
    lead = x.shape[:-1]
    M = int(math.prod(lead))

    # Adaptive tile_m: large MXU tiles for big batches, minimal padding for
    # small / ragged token counts (e.g. ViT's N = 197).
    tile_m = max(8, min(_round_up(tile_m, 8), _round_up(M, 8)))
    M_p = _round_up(M, tile_m)

    # Only x is padded/cast per call (one cheap pass); weights were prepared once.
    x2d = _pad2d(x.reshape(M, dim), M_p, dim_p).astype(jnp.bfloat16)

    nk = hid_p // tile_k
    kernel, needs_acc = _make_kernel(nk, tile_k)

    out_itemsize = jnp.dtype(x.dtype).itemsize
    # VMEM budget: double-buffered x/out tiles, resident bf16 weights
    # (default double-buffered but DMA'd once), f32 accumulator, h temp.
    vmem_est = (2 * tile_m * dim_p * 2
                + 2 * tile_m * dim_p * out_itemsize
                + 2 * dim_p * hid_p * 2
                + 2 * hid_p * dim_p * 2
                + 2 * 8 * hid_p * 4 + 2 * 8 * dim_p * 4
                + (tile_m * dim_p * 4 if needs_acc else 0)
                + tile_m * tile_k * 6)
    vmem_limit = int(min(max(2 * vmem_est, 32 * 1024 * 1024),
                         100 * 1024 * 1024))

    cost = pl.CostEstimate(
        flops=4 * M_p * dim_p * hid_p,            # two matmuls
        transcendentals=M_p * hid_p,              # erf
        bytes_accessed=(x2d.size * 2
                        + params["w1"].size * 2 + params["w2"].size * 2
                        + params["b1"].size * 4 + params["b2"].size * 4
                        + M_p * dim_p * out_itemsize),
    )

    in_specs = [
        pl.BlockSpec((tile_m, dim_p), lambda i: (i, 0)),   # x tile (streamed)
        pl.BlockSpec((dim_p, hid_p), lambda i: (0, 0)),    # W1 (VMEM-resident)
        pl.BlockSpec((1, hid_p), lambda i: (0, 0)),        # b1 (resident)
        pl.BlockSpec((hid_p, dim_p), lambda i: (0, 0)),    # W2 (resident)
        pl.BlockSpec((1, dim_p), lambda i: (0, 0)),        # b2 (resident)
    ]
    scratch_shapes = ([pltpu.VMEM((tile_m, dim_p), jnp.float32)]
                      if needs_acc else [])

    out2d = pl.pallas_call(
        kernel,
        out_shape=jax.ShapeDtypeStruct((M_p, dim_p), x.dtype),
        grid_spec=pltpu.PrefetchScalarGridSpec(
            num_scalar_prefetch=0,
            grid=(M_p // tile_m,),
            in_specs=in_specs,
            out_specs=pl.BlockSpec((tile_m, dim_p), lambda i: (i, 0)),
            scratch_shapes=scratch_shapes,
        ),
        compiler_params=pltpu.CompilerParams(
            dimension_semantics=("parallel",),
            vmem_limit_bytes=vmem_limit,
        ),
        cost_estimate=cost,
    )(x2d, params["w1"], params["b1"], params["w2"], params["b2"])

    return out2d[:M, :dim].reshape(*lead, dim)


def init_params(key, dim, hidden_dim):
    """Deterministic init matching the PyTorch module:
       xavier_uniform_ for weights, normal(std=1e-6) for biases.
       Weights are stored pre-transposed (in_features, out_features)."""
    k1, k2, k3, k4 = jax.random.split(key, 4)
    bound1 = (6.0 / (dim + hidden_dim)) ** 0.5
    w1 = jax.random.uniform(k1, (dim, hidden_dim), jnp.float32, -bound1, bound1)
    b1 = 1e-6 * jax.random.normal(k2, (hidden_dim,), jnp.float32)
    bound2 = (6.0 / (hidden_dim + dim)) ** 0.5
    w2 = jax.random.uniform(k3, (hidden_dim, dim), jnp.float32, -bound2, bound2)
    b2 = 1e-6 * jax.random.normal(k4, (dim,), jnp.float32)
    return w1, b1, w2, b2


def mlp_ref(x, w1, b1, w2, b2):
    """Pure-JAX reference mirroring the kernel's bf16 matmul inputs with f32
    accumulation (Linear -> exact GELU -> Linear, dropout = identity)."""
    bf16 = jnp.bfloat16
    lead = x.shape[:-1]
    dim = x.shape[-1]
    xb = x.reshape(-1, dim).astype(bf16).astype(jnp.float32)
    w1b = w1.astype(bf16).astype(jnp.float32)
    w2b = w2.astype(bf16).astype(jnp.float32)
    h = jnp.dot(xb, w1b, precision=jax.lax.Precision.HIGHEST) + b1
    h = 0.5 * h * (1.0 + jax.lax.erf(h / jnp.sqrt(2.0)))
    y = jnp.dot(h.astype(bf16).astype(jnp.float32), w2b,
                precision=jax.lax.Precision.HIGHEST) + b2
    return y.reshape(*lead, dim)


if __name__ == "__main__":
    key = jax.random.PRNGKey(0)
    kx, kp, kp2 = jax.random.split(key, 3)

    # Small ViT-token-style shapes.
    B, N, dim, hidden_dim = 2, 8, 32, 64
    x = jax.random.normal(kx, (B, N, dim), jnp.float32)
    w1, b1, w2, b2 = init_params(kp, dim, hidden_dim)

    params = prepare_params(w1, b1, w2, b2)        # pad + bf16 cast ONCE
    y = jax.block_until_ready(mlp_block(x, params))
    y_ref = mlp_ref(x, w1, b1, w2, b2)
    assert jnp.allclose(y, y_ref, atol=1e-2, rtol=1e-2), "mismatch vs reference"

    # Ragged token count (M = 14) exercises the adaptive-tile_m padding path.
    x2 = x[:, :7, :]
    y2 = jax.block_until_ready(mlp_block(x2, params))
    y2_ref = mlp_ref(x2, w1, b1, w2, b2)
    assert jnp.allclose(y2, y2_ref, atol=1e-2, rtol=1e-2), "mismatch (ragged M)"

    # Multi-hidden-chunk path (nk > 1) with the in-kernel accumulator.
    hidden_big = 256
    w1b, b1b, w2b, b2b = init_params(kp2, dim, hidden_big)
    params_b = prepare_params(w1b, b1b, w2b, b2b, tile_k=128)   # -> 2 chunks
    y3 = jax.block_until_ready(mlp_block(x, params_b))
    y3_ref = mlp_ref(x, w1b, b1b, w2b, b2b)
    assert jnp.allclose(y3, y3_ref, atol=1e-2, rtol=1e-2), "mismatch (k-chunked)"

    print("KERNEL_OK")
</pallas_src>

<mosaic_0001>
module attributes {stable_mosaic.version = 11 : i64} {
  func.func @kernel(%arg0: i32, %arg1: memref<16x128xbf16, #tpu.memory_space<vmem>>, %arg2: memref<128x128xbf16, #tpu.memory_space<vmem>>, %arg3: memref<1x128xf32, #tpu.memory_space<vmem>>, %arg4: memref<128x128xbf16, #tpu.memory_space<vmem>>, %arg5: memref<1x128xf32, #tpu.memory_space<vmem>>, %arg6: memref<16x128xf32, #tpu.memory_space<vmem>>) attributes {dimension_semantics = [#tpu.dimension_semantics<parallel>], iteration_bounds = array<i64: 1>, scalar_prefetch = 0 : i64, scratch_operands = 0 : i64, tpu.core_type = #tpu.core_type<tc>, window_params = [{transform_indices = @transform_0, window_bounds = array<i64: 16, 128>}, {pipeline_mode = #tpu.pipeline_mode<synchronous>, transform_indices = @transform_1, window_bounds = array<i64: 128, 128>}, {pipeline_mode = #tpu.pipeline_mode<synchronous>, transform_indices = @transform_2, window_bounds = array<i64: 1, 128>}, {pipeline_mode = #tpu.pipeline_mode<synchronous>, transform_indices = @transform_3, window_bounds = array<i64: 128, 128>}, {pipeline_mode = #tpu.pipeline_mode<synchronous>, transform_indices = @transform_4, window_bounds = array<i64: 1, 128>}, {transform_indices = @transform_5, window_bounds = array<i64: 16, 128>}]} {
    %c0 = arith.constant 0 : index
    %c0_0 = arith.constant 0 : index
    %0 = vector.load %arg1[%c0, %c0_0] : memref<16x128xbf16, #tpu.memory_space<vmem>>, vector<16x128xbf16>
    %c0_1 = arith.constant 0 : index
    %c0_2 = arith.constant 0 : index
    %1 = vector.load %arg2[%c0_1, %c0_2] : memref<128x128xbf16, #tpu.memory_space<vmem>>, vector<128x128xbf16>
    %cst = arith.constant dense<0.000000e+00> : vector<16x128xf32>
    %2 = tpu.matmul %0, %1, %cst {dimension_numbers = #tpu.dot_dimension_numbers<[1], [0], [0], [1], [0, 0, 1, 1], [], []>} : vector<16x128xbf16>, vector<128x128xbf16>, vector<16x128xf32> -> vector<16x128xf32>
    %c0_3 = arith.constant 0 : index
    %c0_4 = arith.constant 0 : index
    %3 = vector.load %arg3[%c0_3, %c0_4] : memref<1x128xf32, #tpu.memory_space<vmem>>, vector<1x128xf32>
    %4 = vector.broadcast %3 : vector<1x128xf32> to vector<16x128xf32>
    %5 = arith.addf %2, %4 : vector<16x128xf32>
    %cst_5 = arith.constant 5.000000e-01 : f32
    %6 = vector.broadcast %cst_5 : f32 to vector<16x128xf32>
    %7 = arith.mulf %6, %5 : vector<16x128xf32>
    %cst_6 = arith.constant 0.707106769 : f32
    %8 = vector.broadcast %cst_6 : f32 to vector<16x128xf32>
    %9 = arith.mulf %5, %8 : vector<16x128xf32>
    %10 = math.erf %9 : vector<16x128xf32>
    %cst_7 = arith.constant 1.000000e+00 : f32
    %11 = vector.broadcast %cst_7 : f32 to vector<16x128xf32>
    %12 = arith.addf %11, %10 : vector<16x128xf32>
    %13 = arith.mulf %7, %12 : vector<16x128xf32>
    %14 = arith.truncf %13 : vector<16x128xf32> to vector<16x128xbf16>
    %c0_8 = arith.constant 0 : index
    %c0_9 = arith.constant 0 : index
    %15 = vector.load %arg4[%c0_8, %c0_9] : memref<128x128xbf16, #tpu.memory_space<vmem>>, vector<128x128xbf16>
    %cst_10 = arith.constant dense<0.000000e+00> : vector<16x128xf32>
    %16 = tpu.matmul %14, %15, %cst_10 {dimension_numbers = #tpu.dot_dimension_numbers<[1], [0], [0], [1], [0, 0, 1, 1], [], []>} : vector<16x128xbf16>, vector<128x128xbf16>, vector<16x128xf32> -> vector<16x128xf32>
    %c0_11 = arith.constant 0 : index
    %c0_12 = arith.constant 0 : index
    %17 = vector.load %arg5[%c0_11, %c0_12] : memref<1x128xf32, #tpu.memory_space<vmem>>, vector<1x128xf32>
    %18 = vector.broadcast %17 : vector<1x128xf32> to vector<16x128xf32>
    %19 = arith.addf %16, %18 : vector<16x128xf32>
    %c0_13 = arith.constant 0 : index
    %c0_14 = arith.constant 0 : index
    %20 = vector.load %arg6[%c0_13, %c0_14] : memref<16x128xf32, #tpu.memory_space<vmem>>, vector<16x128xf32>
    tpu.vector_store %arg6[%c0_13, %c0_14], %19 {strides = array<i32>} : memref<16x128xf32, #tpu.memory_space<vmem>>, vector<16x128xf32>,
    return
  }
  func.func @transform_0(%arg0: i32) -> (i32, i32) {
    %c0_i32 = arith.constant 0 : i32
    %c0_i32_0 = arith.constant 0 : i32
    return %arg0, %c0_i32 : i32, i32
  }
  func.func @transform_1(%arg0: i32) -> (i32, i32) {
    %c0_i32 = arith.constant 0 : i32
    %c0_i32_0 = arith.constant 0 : i32
    %c0_i32_1 = arith.constant 0 : i32
    return %c0_i32, %c0_i32_0 : i32, i32
  }
  func.func @transform_2(%arg0: i32) -> (i32, i32) {
    %c0_i32 = arith.constant 0 : i32
    %c0_i32_0 = arith.constant 0 : i32
    %c0_i32_1 = arith.constant 0 : i32
    return %c0_i32, %c0_i32_0 : i32, i32
  }
  func.func @transform_3(%arg0: i32) -> (i32, i32) {
    %c0_i32 = arith.constant 0 : i32
    %c0_i32_0 = arith.constant 0 : i32
    %c0_i32_1 = arith.constant 0 : i32
    return %c0_i32, %c0_i32_0 : i32, i32
  }
  func.func @transform_4(%arg0: i32) -> (i32, i32) {
    %c0_i32 = arith.constant 0 : i32
    %c0_i32_0 = arith.constant 0 : i32
    %c0_i32_1 = arith.constant 0 : i32
    return %c0_i32, %c0_i32_0 : i32, i32
  }
  func.func @transform_5(%arg0: i32) -> (i32, i32) {
    %c0_i32 = arith.constant 0 : i32
    %c0_i32_0 = arith.constant 0 : i32
    return %arg0, %c0_i32 : i32, i32
  }
}

</mosaic_0001>

<bundles_post_ra>
// kernel: tpu_custom_call.1
= control target key start
LH: loop header
LB: loop body
LE: loop exit
PB: predicated region body
PF: predicated region fallthrough
CT: control target
= control target key end

     0   :  { %10 = vsyncpa [#allocation3], 0  ;;  %s578_s0 = inlined_call_operand.hbm [shape: bf16[16,128], index: 0, kind: input, shape index: {}]   ;;  %s579_s1 = inlined_call_operand.hbm [shape: bf16[128,128], index: 1, kind: input, shape index: {}]   ;;  %s580_s2 = inlined_call_operand.vmem [shape: f32[1,128], index: 2, kind: input, shape index: {}]   ;;  %s581_s3 = inlined_call_operand.hbm [shape: bf16[128,128], index: 3, kind: input, shape index: {}]   ;;  %s582_s4 = inlined_call_operand.vmem [shape: f32[1,128], index: 4, kind: input, shape index: {}]   ;;  %s583_s5 = inlined_call_operand.hbm [shape: f32[16,128], index: 5, kind: output, shape index: {}]  }
   0x1   :  { %11 = vsyncpa [#allocation6], 0 }
   0x2   :  { %12 = vsyncpa [#allocation4], 0  ;;  %s520_s18 = smov [#allocation5]   ;;  %s521_s20 = smov [#allocation2]  }
   0x3   :  { %s30_s19 = sshll.u32 %s520_s18, 4  ;;  %s18_s21 = sshll.u32 %s521_s20, 4  ;;  %s31_s19 = int_to_ptr.vmem [resolvable:$true] %s30_s19  ;;  %s19_s21 = int_to_ptr.vmem [resolvable:$true] %s18_s21 }
   0x4   :  { %s442_s22 = scalar_lea.vmem %s31_s19, 1024  ;;  %p447_p1 = scmp.lt.s32.totalorder %s31_s19, %s31_s19 }
   0x5   :  { %p443_p0 = scmp.ne.s32.totalorder %s31_s19, %s442_s22  ;;  %p448_p2 = scmp.lt.s32.totalorder %s442_s22, %s442_s22 }
   0x7   :  { %p449_p3 = por %p448_p2, %p447_p1 }
   0x9   :  { %p450_p4 = pnand %p449_p3, %p443_p0 }
   0xb   :  { %453 = shalt.err (!%p450_p4)
}
   0xc   :  { %s522_s23 = smov 64   ;;  %s523_s24 = smov 4  }
   0xd   :  { %36 = dma.hbm_to_vmem [thread:$0]  %s579_s1, 1024, %s31_s19, [#allocation6], %s522_s23, %s522_s23, %s523_s24  }
   0xe   :  { %s462_s27 = scalar_lea.vmem %s19_s21, 128  ;;  %p467_p6 = scmp.lt.s32.totalorder %s19_s21, %s19_s21 }
   0xf   :  { %p463_p5 = scmp.ne.s32.totalorder %s19_s21, %s462_s27  ;;  %p468_p7 = scmp.lt.s32.totalorder %s462_s27, %s462_s27 }
  0x11   :  { %p469_p8 = por %p468_p7, %p467_p6 }
  0x13   :  { %p470_p9 = pnand %p469_p8, %p463_p5 }
  0x15   :  { %473 = shalt.err (!%p470_p9)
}
  0x16   :  { %24 = dma.hbm_to_vmem [thread:$0]  %s578_s0, 128, %s19_s21, [#allocation3], %s522_s23, %s522_s23, %s523_s24  }
  0x17   :  { %s524_s30 = smov [#allocation7]  }
  0x18   :  { %s44_s6 = sshll.u32 %s524_s30, 4  ;;  %s45_s6 = int_to_ptr.vmem [resolvable:$true] %s44_s6 }
  0x19   :  { %s482_s7 = scalar_lea.vmem %s45_s6, 1024  ;;  %p487_p11 = scmp.lt.s32.totalorder %s45_s6, %s45_s6 }
  0x1a   :  { %p483_p10 = scmp.ne.s32.totalorder %s45_s6, %s482_s7  ;;  %p488_p12 = scmp.lt.s32.totalorder %s482_s7, %s482_s7 }
  0x1c   :  { %p489_p13 = por %p488_p12, %p487_p11 }
  0x1e   :  { %p490_p0 = pnand %p489_p13, %p483_p10 }
  0x20   :  { %493 = shalt.err (!%p490_p0)
}
  0x21   :  { %50 = dma.hbm_to_vmem [thread:$0]  %s581_s3, 1024, %s45_s6, [#allocation6], %s522_s23, %s522_s23, %s523_s24  }
  0x22   :  { %514 = dma.done.wait [#allocation3], 128  }
  0x23   :  { %515 = vsyncadd [#allocation3], 4294967168 }
  0x24   :  { %516 = dma.done.wait [#allocation6], 2048  }
  0x25   :  { %517 = vsyncadd [#allocation6], 4294965248  ;;  %v525_v0 = vmov 0.0   ;;  %vm526_vm0 = vmmov 0   ;;  %v413_v1 = vld [vmem:[#allocation5 + $0x38] sm:$0xff]   ;;  %v414_v2 = vld [vmem:[#allocation5 + $0x30] sm:$0xff]  }
  0x26   :  { %363 = vmatprep.subr.bf16.mxu0 %v525_v0  ;;  %379 = vmatprep.mubr.msk.bf16.mxu0 %vm526_vm0, %v525_v0  ;;  %v415_v3 = vld [vmem:[#allocation5 + $0x28] sm:$0xff]   ;;  %v422_v4 = vld [vmem:[#allocation7 + $0x38] sm:$0xff]   ;;  %v416_v5 = vld [vmem:[#allocation5 + $0x20] sm:$0xff]   ;;  %s527_s10 = smov [#allocation8]  }
  0x27   :  { %383 = vmatprep.subr.bf16.mxu1 %v525_v0  ;;  %399 = vmatprep.mubr.msk.bf16.mxu1 %vm526_vm0, %v525_v0  ;;  %v417_v6 = vld [vmem:[#allocation5 + $0x18] sm:$0xff]   ;;  %v418_v7 = vld [vmem:[#allocation5 + $0x10] sm:$0xff]   ;;  %v419_v8 = vld [vmem:[#allocation5 + $0x8] sm:$0xff]   ;;  %s313_s11 = sshll.u32 %s527_s10, 4  ;;  %s314_s11 = int_to_ptr.vmem [resolvable:$true] %s313_s11 }
  0x28   :  { %364 = vmatpush3.bf16.msra.mxu0 %v413_v1  ;;  %384 = vmatpush3.bf16.msra.mxu1 %v422_v4  ;;  %v420_v9 = vld [vmem:[#allocation5] sm:$0xff]   ;;  %v421_v10 = vld [vmem:[#allocation2] sm:$0xff]   ;;  %v423_v11 = vld [vmem:[#allocation7 + $0x30] sm:$0xff]   ;;  %s494_s12 = scalar_lea.vmem %s314_s11, 256  ;;  %p499_p2 = scmp.lt.s32.totalorder %s314_s11, %s314_s11 }
  0x29   :  { %365 = vmatprep.subr.bf16.mxu0 %v525_v0  ;;  %385 = vmatprep.subr.bf16.mxu1 %v525_v0  ;;  %v424_v12 = vld [vmem:[#allocation7 + $0x28] sm:$0xff]   ;;  %v425_v13 = vld [vmem:[#allocation7 + $0x20] sm:$0xff]   ;;  %v426_v14 = vld [vmem:[#allocation7 + $0x18] sm:$0xff]   ;;  %p495_p1 = scmp.ne.s32.totalorder %s314_s11, %s494_s12  ;;  %p500_p3 = scmp.lt.s32.totalorder %s494_s12, %s494_s12 }
  0x2a   :  { %v427_v15 = vld [vmem:[#allocation7 + $0x10] sm:$0xff]   ;;  %v428_v16 = vld [vmem:[#allocation7 + $0x8] sm:$0xff]   ;;  %v429_v17 = vld [vmem:[#allocation7] sm:$0xff]  }
  0x2b   :  { %v326_v18 = vld [vmem:[%s580_s2] ss:$0 sm:$0xff]  ;;  %p501_p4 = por %p500_p3, %p499_p2 }
  0x2c   :  { %366 = vmatpush3.bf16.msra.mxu0 %v414_v2  ;;  %386 = vmatpush3.bf16.msra.mxu1 %v423_v11  ;;  %v336_v36 = vld [vmem:[%s582_s4] ss:$0 sm:$0xff] }
  0x2d   :  { %367 = vmatprep.subr.bf16.mxu0 %v525_v0  ;;  %387 = vmatprep.subr.bf16.mxu1 %v525_v0  ;;  %p502_p5 = pnand %p501_p4, %p495_p1 }
  0x30   :  { %368 = vmatpush3.bf16.msra.mxu0 %v415_v3  ;;  %388 = vmatpush3.bf16.msra.mxu1 %v424_v12 }
  0x31   :  { %369 = vmatprep.subr.bf16.mxu0 %v525_v0  ;;  %389 = vmatprep.subr.bf16.mxu1 %v525_v0 }
  0x34   :  { %370 = vmatpush3.bf16.msra.mxu0 %v416_v5  ;;  %390 = vmatpush3.bf16.msra.mxu1 %v425_v13 }
  0x35   :  { %371 = vmatprep.subr.bf16.mxu0 %v525_v0  ;;  %391 = vmatprep.subr.bf16.mxu1 %v525_v0 }
  0x38   :  { %372 = vmatpush3.bf16.msra.mxu0 %v417_v6  ;;  %392 = vmatpush3.bf16.msra.mxu1 %v426_v14 }
  0x39   :  { %373 = vmatprep.subr.bf16.mxu0 %v525_v0  ;;  %393 = vmatprep.subr.bf16.mxu1 %v525_v0 }
  0x3c   :  { %374 = vmatpush3.bf16.msra.mxu0 %v418_v7  ;;  %394 = vmatpush3.bf16.msra.mxu1 %v427_v15 }
  0x3d   :  { %375 = vmatprep.subr.bf16.mxu0 %v525_v0  ;;  %395 = vmatprep.subr.bf16.mxu1 %v525_v0 }
  0x40   :  { %376 = vmatpush3.bf16.msra.mxu0 %v419_v8  ;;  %396 = vmatpush3.bf16.msra.mxu1 %v428_v16 }
  0x41   :  { %377 = vmatprep.subr.bf16.mxu0 %v525_v0  ;;  %397 = vmatprep.subr.bf16.mxu1 %v525_v0 }
  0x44   :  { %378 = vmatpush3.bf16.msra.mxu0 %v420_v9  ;;  %398 = vmatpush3.bf16.msra.mxu1 %v429_v17 }
  0x47   :  { %380 = vmatmul.mubr.bf16.vlgmr.msra.gmra.mxu0 %v421_v10 }
 0x107   :  { %v176_v19 = vpop.f32.mrf.mxu0 }
 0x108   :  { %v177_v20 = vadd.f32 %v326_v18, %v176_v19 }
 0x109   :  { %v381_v21 = vpop.f32.mrf.mxu0 }
 0x10a   :  { %v185_v22 = vmul.f32 0.70710677, %v177_v20  ;;  %v183_v30 = vmul.f32 0.5, %v177_v20 }
 0x10b   :  { %v179_v23 = vpop.f32.mrf.mxu0 }
 0x10c   :  { %430 = verf.f32 %v185_v22  ;;  %v180_v24 = vadd.f32 %v326_v18, %v179_v23 }
 0x10d   :  { %v382_v25 = vpop.f32.mrf.mxu0 }
 0x10e   :  { %v186_v26 = vmul.f32 0.70710677, %v180_v24  ;;  %v184_v31 = vmul.f32 0.5, %v180_v24 }
 0x110   :  { %432 = verf.f32 %v186_v26 }
 0x119   :  { %v431_v27 = vpop.eup %430 }
 0x11a   :  { %v189_v28 = vadd.f32 1.0, %v431_v27 }
 0x11c   :  { %v191_v33 = vmul.f32 %v189_v28, %v183_v30 }
 0x11d   :  { %v433_v29 = vpop.eup %432 }
 0x11e   :  { %v190_v32 = vadd.f32 1.0, %v433_v29 }
 0x120   :  { %v192_v34 = vmul.f32 %v190_v32, %v184_v31 }
 0x122   :  { %v193_v35 = vpack.c.bf16 %v192_v34, %v191_v33 }
 0x124   :  { %400 = vmatmul.mubr.bf16.vlgmr.msra.gmra.mxu1 %v193_v35 }
 0x1e4   :  { %v299_v37 = vpop.f32.mrf.mxu1 }
 0x1e5   :  { %v300_v38 = vadd.f32 %v336_v36, %v299_v37 }
 0x1e6   :  { %v401_v39 = vpop.f32.mrf.mxu1 }
 0x1e7   :  { %306 = vst [vmem:[#allocation8] sm:$0xff] %v300_v38 }
 0x1e8   :  { %v302_v40 = vpop.f32.mrf.mxu1 }
 0x1e9   :  { %v303_v41 = vadd.f32 %v336_v36, %v302_v40 }
 0x1ea   :  { %v402_v42 = vpop.f32.mrf.mxu1 }
 0x1eb   :  { %307 = vst [vmem:[#allocation8 + $0x8] sm:$0xff] %v303_v41 }
 0x1ec   :  { %505 = shalt.err (!%p502_p5)
}
 0x1ed   :  { %s528_s13 = smov 128   ;;  %s529_s4 = smov 8  }
 0x1ee   :  { %319 = dma.vmem_to_hbm [thread:$0]  %s314_s11, 256, %s583_s5, [#allocation4], %s528_s13, %s528_s13, %s529_s4  }
 0x1ef   :  { %518 = dma.done.wait [#allocation4], 256  }
 0x1f0   :  { %519 = vsyncadd [#allocation4], 4294967040 }
 0x1f1   :  { %323 = vsyncpa [#allocation3], 1 }
 0x1f2   :  { %324 = vsyncpa [#allocation6], 1 }
 0x1f3   :  { %325 = vsyncpa [#allocation4], 1 }

</bundles_post_ra>
